<compile_context>
chip_gen: v6e
topology: v6e:2x2x1
jax: 0.10.0
libtpu: 0.0.40
codegen_flags: <defaults>
</compile_context>

<pallas_src>
import functools

import jax
import jax.numpy as jnp
from jax.experimental import pallas as pl
from jax.experimental.pallas import tpu as pltpu


def attention_kernel(x_ref, w1t_ref, w2t_ref, o_ref, *, hw_true, hw_pad):
    # x_ref block: (bt, C, HW_blk). Spatial (lane) reductions + fused SE MLP.
    xb = x_ref[...]
    bt = xb.shape[0]

    # Global average pool: accumulate in f32; divide by the true HW.
    avg = jnp.sum(xb, axis=2, dtype=jnp.float32) * (1.0 / float(hw_true))  # (bt, C)

    # Global max pool. Only the small padded path needs lane masking; the mask
    # is a (1, 1, HWp) iota broadcast, not a full-block int32 temporary.
    if hw_pad > hw_true:
        lane = jax.lax.broadcasted_iota(jnp.int32, (1, 1, hw_pad), 2)
        xm = jnp.where(lane < hw_true, xb, jnp.asarray(-jnp.inf, dtype=xb.dtype))
    else:
        xm = xb
    mx = jnp.max(xm, axis=2).astype(jnp.float32)                           # (bt, C)

    # Fused FC: one matmul pair for both pooled branches (Ch is tiny; the MXU
    # work hides completely under the block DMA, so no padding/reshaping).
    pooled = jnp.concatenate([avg, mx], axis=0)                            # (2bt, C)
    h = jnp.dot(pooled, w1t_ref[...], preferred_element_type=jnp.float32)  # (2bt, Ch)
    h = jnp.maximum(h, 0.0)                                                # ReLU
    o = jnp.dot(h, w2t_ref[...], preferred_element_type=jnp.float32)       # (2bt, C)

    att = jax.nn.sigmoid(o[:bt] + o[bt:])                                  # (bt, C)
    o_ref[...] = xb * att.astype(xb.dtype)[:, :, None]


def attention_module(x, w1, w2):
    """x: (B, C, H, W) NCHW.
    w1: (Ch, C)  == Conv2d(C, Ch, 1, bias=False).weight.squeeze(-1, -2)
    w2: (C, Ch)  == Conv2d(Ch, C, 1, bias=False).weight.squeeze(-1, -2)
    """
    B, C, H, W = x.shape
    Ch = w1.shape[0]
    HW = H * W
    itemsize = jnp.dtype(x.dtype).itemsize

    # Only tiny, non-128-multiple spatial sizes get wrapper-side padding (so
    # tail stores are unmasked); otherwise pass the tensor through unpadded.
    use_pad = (HW % 128 != 0) and (HW < 512)
    HWp = ((HW + 127) // 128) * 128 if use_pad else HW

    x3 = x.reshape(B, C, HW)
    if use_pad:
        x3 = jnp.pad(x3, ((0, 0), (0, 0), (0, HWp - HW)))
    w1t = jnp.transpose(w1)                         # (C, Ch)
    w2t = jnp.transpose(w2)                         # (Ch, C)

    # --- generation-aware block sizing --------------------------------------
    try:
        vmem_cap = int(pltpu.get_tpu_info().vmem_capacity_bytes)
    except Exception:
        vmem_cap = 64 << 20                         # conservative fallback
    multi_core = vmem_cap <= (64 << 20)             # v7x-like: 64 MiB VMEM, 2 TCs

    # In-VMEM footprint of one batch row, padded to (8, 128) tiling.
    c_pad = ((C + 7) // 8) * 8
    hw_vmem = ((HWp + 127) // 128) * 128
    per_batch_bytes = c_pad * hw_vmem * itemsize

    # Double-buffered input + output ~= 4x a block; ~40 MiB budget on 64 MiB
    # parts, ~64 MiB on 128 MiB parts.
    block_budget = min((vmem_cap * 5) // 8, 64 << 20)
    max_bt = max(1, block_budget // (4 * per_batch_bytes))
    bt = min(B, max_bt)
    steps = (B + bt - 1) // bt
    if multi_core and B >= 2:
        # Even number of grid steps so both TensorCores get equal work.
        while steps % 2 != 0 and bt > 1:
            bt -= 1
            steps = (B + bt - 1) // bt
    grid = (steps,)

    block_bytes = bt * per_batch_bytes
    weight_bytes = 2 * C * Ch * jnp.dtype(w1.dtype).itemsize
    # 4x block (double-buffered in + out) + ~1x block for in-kernel temporaries.
    vmem_limit = 5 * block_bytes + 8 * weight_bytes + (2 << 20)
    vmem_limit = int(min(max(vmem_limit, 16 << 20), vmem_cap - (4 << 20)))

    cost = pl.CostEstimate(
        flops=3 * B * C * HW + 4 * (2 * B) * C * Ch,
        transcendentals=B * C,
        bytes_accessed=2 * B * C * HW * itemsize + 2 * weight_bytes,
    )

    kernel = functools.partial(attention_kernel, hw_true=HW, hw_pad=HWp)

    out = pl.pallas_call(
        kernel,
        out_shape=jax.ShapeDtypeStruct((B, C, HWp), x.dtype),
        grid_spec=pltpu.PrefetchScalarGridSpec(
            num_scalar_prefetch=0,
            grid=grid,
            in_specs=[
                pl.BlockSpec((bt, C, HWp), lambda b: (b, 0, 0)),
                pl.BlockSpec((C, Ch), lambda b: (0, 0)),
                pl.BlockSpec((Ch, C), lambda b: (0, 0)),
            ],
            out_specs=pl.BlockSpec((bt, C, HWp), lambda b: (b, 0, 0)),
        ),
        input_output_aliases={0: 0},
        compiler_params=pltpu.CompilerParams(
            dimension_semantics=("parallel",),
            vmem_limit_bytes=vmem_limit),
        cost_estimate=cost,
    )(x3, w1t, w2t)

    if use_pad:
        out = out[:, :, :HW]
    return out.reshape(B, C, H, W)


def attention_ref(x, w1, w2):
    """Pure-JAX reference mirroring the PyTorch forward."""
    avg = jnp.mean(x, axis=(2, 3))                  # (B, C)
    mx = jnp.max(x, axis=(2, 3))                    # (B, C)

    def fc(p):
        return jnp.maximum(p @ w1.T, 0.0) @ w2.T

    att = jax.nn.sigmoid(fc(avg) + fc(mx))[:, :, None, None]
    return x * att


if __name__ == "__main__":
    # Small shapes consistent with the module: in_channels=64, reduction=16.
    B, C, H, W = 2, 64, 16, 16
    reduction = 16
    Ch = C // reduction                             # hidden channels = 4

    key = jax.random.PRNGKey(0)
    kx, k1, k2 = jax.random.split(key, 3)
    x = jax.random.normal(kx, (B, C, H, W), dtype=jnp.float32)
    # Deterministic synthetic weights (Conv2d 1x1 weights, kernel dims squeezed).
    w1 = jax.random.normal(k1, (Ch, C), dtype=jnp.float32) * (1.0 / jnp.sqrt(C))
    w2 = jax.random.normal(k2, (C, Ch), dtype=jnp.float32) * (1.0 / jnp.sqrt(Ch))

    out = attention_module(x, w1, w2)
    out = jax.block_until_ready(out)

    ref = attention_ref(x, w1, w2)
    assert out.shape == (B, C, H, W)
    assert jnp.allclose(out, ref, rtol=1e-5, atol=1e-5), "mismatch vs reference"

    print("KERNEL_OK")
</pallas_src>

<mosaic_0001>
module attributes {stable_mosaic.version = 11 : i64} {
  func.func @attention_kernel(%arg0: i32, %arg1: memref<1x64x256xf32, #tpu.memory_space<vmem>>, %arg2: memref<64x4xf32, #tpu.memory_space<vmem>>, %arg3: memref<4x64xf32, #tpu.memory_space<vmem>>, %arg4: memref<1x64x256xf32, #tpu.memory_space<vmem>>) attributes {dimension_semantics = [#tpu.dimension_semantics<parallel>], iteration_bounds = array<i64: 2>, scalar_prefetch = 0 : i64, scratch_operands = 0 : i64, tpu.core_type = #tpu.core_type<tc>, window_params = [{transform_indices = @transform_0, window_bounds = array<i64: 1, 64, 256>}, {pipeline_mode = #tpu.pipeline_mode<synchronous>, transform_indices = @transform_1, window_bounds = array<i64: 64, 4>}, {pipeline_mode = #tpu.pipeline_mode<synchronous>, transform_indices = @transform_2, window_bounds = array<i64: 4, 64>}, {transform_indices = @transform_3, window_bounds = array<i64: 1, 64, 256>}]} {
    %c0 = arith.constant 0 : index
    %c0_0 = arith.constant 0 : index
    %c0_1 = arith.constant 0 : index
    %0 = vector.load %arg1[%c0, %c0_0, %c0_1] : memref<1x64x256xf32, #tpu.memory_space<vmem>>, vector<1x64x256xf32>
    %cst = arith.constant dense<0.000000e+00> : vector<1x64xf32>
    %1 = vector.multi_reduction <add>, %0, %cst [2] : vector<1x64x256xf32> to vector<1x64xf32>
    %cst_2 = arith.constant 3.906250e-03 : f32
    %2 = vector.broadcast %cst_2 : f32 to vector<1x64xf32>
    %3 = arith.mulf %1, %2 : vector<1x64xf32>
    %cst_3 = arith.constant dense<0xFF800000> : vector<1x64xf32>
    %4 = vector.multi_reduction <maximumf>, %0, %cst_3 [2] : vector<1x64x256xf32> to vector<1x64xf32>
    %5 = tpu.concatenate %3, %4 in 0 : vector<1x64xf32>, vector<1x64xf32> -> vector<2x64xf32>
    %c0_4 = arith.constant 0 : index
    %c0_5 = arith.constant 0 : index
    %6 = vector.load %arg2[%c0_4, %c0_5] : memref<64x4xf32, #tpu.memory_space<vmem>>, vector<64x4xf32>
    %cst_6 = arith.constant dense<0.000000e+00> : vector<2x4xf32>
    %7 = tpu.matmul %5, %6, %cst_6 {dimension_numbers = #tpu.dot_dimension_numbers<[1], [0], [0], [1], [0, 0, 1, 1], [], []>} : vector<2x64xf32>, vector<64x4xf32>, vector<2x4xf32> -> vector<2x4xf32>
    %cst_7 = arith.constant 0.000000e+00 : f32
    %8 = vector.broadcast %cst_7 : f32 to vector<2x4xf32>
    %9 = arith.maximumf %7, %8 : vector<2x4xf32>
    %c0_8 = arith.constant 0 : index
    %c0_9 = arith.constant 0 : index
    %10 = vector.load %arg3[%c0_8, %c0_9] : memref<4x64xf32, #tpu.memory_space<vmem>>, vector<4x64xf32>
    %cst_10 = arith.constant dense<0.000000e+00> : vector<2x64xf32>
    %11 = tpu.matmul %9, %10, %cst_10 {dimension_numbers = #tpu.dot_dimension_numbers<[1], [0], [0], [1], [0, 0, 1, 1], [], []>} : vector<2x4xf32>, vector<4x64xf32>, vector<2x64xf32> -> vector<2x64xf32>
    %12 = vector.extract_strided_slice %11 {offsets = [0, 0], sizes = [1, 64], strides = [1, 1]} : vector<2x64xf32> to vector<1x64xf32>
    %13 = vector.extract_strided_slice %11 {offsets = [1, 0], sizes = [1, 64], strides = [1, 1]} : vector<2x64xf32> to vector<1x64xf32>
    %14 = arith.addf %12, %13 : vector<1x64xf32>
    %15 = arith.negf %14 : vector<1x64xf32>
    %16 = math.exp %15 : vector<1x64xf32>
    %cst_11 = arith.constant 1.000000e+00 : f32
    %17 = vector.broadcast %cst_11 : f32 to vector<1x64xf32>
    %18 = arith.addf %17, %16 : vector<1x64xf32>
    %19 = arith.divf %17, %18 : vector<1x64xf32>
    %20 = vector.shape_cast %19 : vector<1x64xf32> to vector<1x64x1xf32>
    %21 = vector.broadcast %20 : vector<1x64x1xf32> to vector<1x64x256xf32>
    %22 = arith.mulf %0, %21 : vector<1x64x256xf32>
    %c0_12 = arith.constant 0 : index
    %c0_13 = arith.constant 0 : index
    %c0_14 = arith.constant 0 : index
    %23 = vector.load %arg4[%c0_12, %c0_13, %c0_14] : memref<1x64x256xf32, #tpu.memory_space<vmem>>, vector<1x64x256xf32>
    tpu.vector_store %arg4[%c0_12, %c0_13, %c0_14], %22 {strides = array<i32>} : memref<1x64x256xf32, #tpu.memory_space<vmem>>, vector<1x64x256xf32>,
    return
  }
  func.func @transform_0(%arg0: i32) -> (i32, i32, i32) {
    %c0_i32 = arith.constant 0 : i32
    %c0_i32_0 = arith.constant 0 : i32
    %c0_i32_1 = arith.constant 0 : i32
    return %arg0, %c0_i32, %c0_i32_0 : i32, i32, i32
  }
  func.func @transform_1(%arg0: i32) -> (i32, i32) {
    %c0_i32 = arith.constant 0 : i32
    %c0_i32_0 = arith.constant 0 : i32
    %c0_i32_1 = arith.constant 0 : i32
    return %c0_i32, %c0_i32_0 : i32, i32
  }
  func.func @transform_2(%arg0: i32) -> (i32, i32) {
    %c0_i32 = arith.constant 0 : i32
    %c0_i32_0 = arith.constant 0 : i32
    %c0_i32_1 = arith.constant 0 : i32
    return %c0_i32, %c0_i32_0 : i32, i32
  }
  func.func @transform_3(%arg0: i32) -> (i32, i32, i32) {
    %c0_i32 = arith.constant 0 : i32
    %c0_i32_0 = arith.constant 0 : i32
    %c0_i32_1 = arith.constant 0 : i32
    return %arg0, %c0_i32, %c0_i32_0 : i32, i32, i32
  }
}

</mosaic_0001>

<bundles_post_ra>
// kernel: tpu_custom_call.1
= control target key start
LH: loop header
LB: loop body
LE: loop exit
PB: predicated region body
PF: predicated region fallthrough
CT: control target
= control target key end

     0   :  { %8 = vsyncpa [#allocation3], 0  ;;  %s1255_s0 = inlined_call_operand.hbm [shape: f32[2,64,256], index: 0, kind: input, shape index: {}, may-alias: {0,3}]   ;;  %s1256_s1 = inlined_call_operand.vmem [shape: f32[64,4], index: 1, kind: input, shape index: {}]   ;;  %s1257_s2 = inlined_call_operand.vmem [shape: f32[4,64], index: 2, kind: input, shape index: {}]   ;;  %s1258_s3 = inlined_call_operand.hbm [shape: f32[2,64,256], index: 3, kind: output, shape index: {}, may-alias: {0,3}]  }
   0x1   :  { %10 = vsyncpa [#allocation3 + $0x1], 0 }
   0x2   :  { %11 = vsyncpa [#allocation4], 0 }
   0x3   :  { %13 = vsyncpa [#allocation4 + $0x1], 0  ;;  %s934_s12 = smov 0   ;;  %s936_s13 = smov 0  }
   0x4   :  { %s938_s14 = smov 0   ;;  %s940_s15 = smov 0  }
   0x5 LB: > { %s955_s16 = sadd.s32 4294967295, %s904_s15   ;;  %s701_s17 = sadd.s32 4294967294, %s904_s15   ;;  %s904_s15 = sphi %s940_s15, %s1273_s15   ;;  %s900_s14 = sphi %s938_s14, %s1272_s14   ;;  %s896_s13 = sphi %s936_s13, %s1271_s13   ;;  %s892_s12 = sphi %s934_s12, %s1270_s12  }
   0x6   : > { %s959_s18 = sadd.s32 1, %s904_s15   ;;  %s26_s19 = sadd.s32 1, %s900_s14 }
   0x7   : > { %s23_s20 = ssub.s32 %s904_s15, %s959_s18  ;;  %p33_p0 = scmp.ne.s32.totalorder %s900_s14, %s896_s13 }
   0x8   : > { %p24_p1 = scmp.eq.s32.totalorder %s23_s20, 0  ;;  %p34_p2 = scmp.eq.s32.totalorder %s904_s15, 0 }
   0x9   : > { %p39_p3 = scmp.ne.s32.totalorder %s896_s13, %s892_s12  ;;  %p40_p4 = scmp.eq.s32.totalorder %s955_s16, 0 }
   0xa   : > { %s971_s21 = scalar_select %p24_p1, %s900_s14, %s26_s19  }
   0xb   : > { %p973_p5 = por %p34_p2, %p33_p0  ;;  %p977_p6 = por %p40_p4, %p39_p3 }
   0xc   : > { %p105_p7 = scmp.eq.s32.totalorder %s955_s16, 1  ;;  %p111_p8 = scmp.eq.s32.totalorder %s701_s17, 1 }
   0xd   : > { %s1262_s23 = scalar_select %p977_p6, 1, 0 }
   0xe   : > { %p768_p10 = scmp.lt.s32.totalorder %s904_s15, 2  ;;  %p984_p11 = por %p105_p7, %p33_p0 }
   0xf   : > { %p988_p12 = por %p111_p8, %p39_p3  ;;  %s137_s26 = sand.u32 1, %s900_s14  }
  0x10   : > { %s1263_s24 = scalar_select %p984_p11, 1, 0 }
  0x11   : > { %s1264_s25 = scalar_select %p988_p12, 1, 0 }
  0x12   : > { %s719_s27 = sshll.u32 %s904_s15, 11  ;;  %s704_s28 = sshll.u32 %s137_s26, 7 }
  0x13   : > { %s997_s4 = scalar_lea.hbm %s1255_s0, %s719_s27  ;;  %s141_s5 = scalar_lea.vmem [#allocation2], %s704_s28 }
  0x14   : > { %s148_s6 = sshll.u32 %s141_s5, 4  ;;  %p1001_p13 = pnand %p768_p10, %p973_p5  ;;  %s1005_s6 = int_to_ptr.vmem [resolvable:$true] %s148_s6 }
  0x15   : > { %s1007_s8 = scalar_lea.sflag [#allocation3], %s137_s26  ;;  %s812_s9 = scalar_lea.hbm %s997_s4, 2048 }
  0x16   : > { %p813_p0 = scmp.ne.s32.totalorder %s997_s4, %s812_s9  ;;  %p814_p1 = pneg %p1001_p13 }
  0x17   : > { %s817_s17 = scalar_lea.hbm %s1255_s0, 4096  ;;  %p818_p4 = scmp.lt.s32.totalorder %s997_s4, %s1255_s0 }
  0x18   : > { %p815_p2 = pnand %p814_p1, %p813_p0  ;;  %p819_p5 = scmp.lt.s32.totalorder %s817_s17, %s812_s9 }
  0x1a   : > { %p816_p3 = pneg %p815_p2  ;;  %p820_p7 = por %p819_p5, %p818_p4 }
  0x1c   : > { %p821_p8 = pnand %p820_p7, %p816_p3 }
  0x1e   : > { %824 = shalt.err (!%p821_p8)
}
  0x1f   : > { %s825_s22 = scalar_lea.vmem %s1005_s6, 2048  ;;  %s906_s26 = smov [#allocation2]  }
  0x20   : > { %p826_p10 = scmp.ne.s32.totalorder %s1005_s6, %s825_s22  ;;  %s830_s27 = sshll.u32 %s906_s26, 4  ;;  %s831_s27 = int_to_ptr.vmem [resolvable:$false] %s830_s27 }
  0x21   : > { %s832_s28 = scalar_lea.vmem %s831_s27, 4096  ;;  %p833_p2 = scmp.lt.s32.totalorder %s1005_s6, %s831_s27 }
  0x22   : > { %p828_p9 = pnand %p826_p10, %p814_p1  ;;  %p834_p12 = scmp.lt.s32.totalorder %s832_s28, %s825_s22 }
  0x24   : > { %p829_p0 = pneg %p828_p9  ;;  %p835_p11 = por %p834_p12, %p833_p2 }
  0x26   : > { %p836_p6 = pnand %p835_p11, %p829_p0 }
  0x28   : > { %839 = shalt.err (!%p836_p6)
}
  0x29   : > { %s907_s29 = smov 256   ;;  %s908_s30 = smov 16  }
  0x2a   : > { %763 = dma.hbm_to_vmem [thread:$0]  (!%p1001_p13), %s997_s4, 2048, %s1005_s6, %s1007_s8, %s907_s29, %s907_s29, %s908_s30  }
  0x2b   : > { %p707_p9 = scmp.ge.s32.totalorder %s904_s15, 1  ;;  %p156_p1 = scmp.lt.s32.totalorder %s904_s15, 3 }
  0x2d   : > { %p157_p3 = pnand %p707_p9, %p156_p1 }
  0x2e   : > { %s1031_s5 = sand.u32 (!%p157_p3), 1, %s896_s13   ;;  %p1266_p6 = scmp.ne.s32.totalorder (!%p157_p3), %s1262_s23, 0 }
  0x2f   : > { %160 = sbr.rel (%p157_p3) target bundleno = 801 (0x321), region = 32  ;;  %s708_s9 = sshll.u32 (!%p157_p3), %s1031_s5, 7 }
  0x30   : > { %s163_s10 = scalar_lea.sflag (!%p157_p3), [#allocation3], %s1031_s5  ;;  %s1037_s11 = scalar_lea.vmem (!%p157_p3), [#allocation2], %s708_s9 }
  0x34   : > { %883 = dma.done.wait (%p1266_p6), %s163_s10, 2048  }
  0x35   : > { %885 = vsyncadd (%p1266_p6), %s163_s10, 4294965248  ;;  %v1044_v0 = vld [vmem:[%s1037_s11 + $0x20] sm:$0xff]  ;;  %v1047_v1 = vld [vmem:[%s1037_s11 + $0x28] sm:$0xff]  ;;  %v909_v32 = vmov 0.0   ;;  %vm910_vm0 = vmmov 0   ;;  %v269_v44 = vlaneseq  ;;  %vm280_vm1 = vcmask 130112  }
  0x36   : > { %v1050_v2 = vld [vmem:[%s1037_s11] sm:$0xff]  ;;  %v211_v3 = vadd.f32 %v1047_v1, %v1044_v0  ;;  %v1055_v4 = vld [vmem:[%s1037_s11 + $0x8] sm:$0xff]  ;;  %v1058_v5 = vld [vmem:[%s1037_s11 + $0x30] sm:$0xff]  ;;  %v243_v16 = vmax.f32 %v1044_v0, %v1047_v1  ;;  %732 = vmatprep.subr.mxu0 %v909_v32  ;;  %751 = vmatprep.subr.mxu1 %v909_v32  ;;  %vm287_vm2 = vcmask 195712   ;;  %vm294_vm3 = vcmask 261312   ;;  %s1175_s6 = scalar_lea.vmem [#allocation5], %s708_s9 }
  0x37   : > { %v1061_v6 = vld [vmem:[%s1037_s11 + $0x38] sm:$0xff]  ;;  %v205_v7 = vadd.f32 %v1055_v4, %v1050_v2  ;;  %v1066_v8 = vld [vmem:[%s1037_s11 + $0x10] sm:$0xff]  ;;  %v237_v13 = vmax.f32 %v1050_v2, %v1055_v4  ;;  %v1080_v14 = vld [vmem:[%s1037_s11 + $0x40] sm:$0xff]  ;;  %748 = vmatprep.mubr.msk.f32.mxu0 %vm910_vm0, %v909_v32  ;;  %753 = vmatprep.mubr.msk.f32.mxu1 %vm910_vm0, %v909_v32  ;;  %v270_v47 = vand.u32 127, %v269_v44  ;;  %v1147_v51 = vshrl.u32 %v269_v44, 7  ;;  %s720_s9 = sshll.u32 %s955_s16, 11 }
  0x38   : > { %v1069_v9 = vld [vmem:[%s1037_s11 + $0x18] sm:$0xff]  ;;  %212 = vadd.xlane.f32.xlu1 %v211_v3  ;;  %v214_v10 = vadd.f32 %v1061_v6, %v1058_v5  ;;  %v1083_v15 = vld [vmem:[%s1037_s11 + $0x48] sm:$0xff]  ;;  %v1090_v18 = vld [vmem:[%s1037_s11 + $0x50] sm:$0xff]  ;;  %v246_v20 = vmax.f32 %v1058_v5, %v1061_v6  ;;  %vm301_vm4 = vcmask 326912   ;;  %vm308_vm5 = vcmask 392512   ;;  %s628_s7 = sshll.u32 %s1175_s6, 4  ;;  %s1206_s19 = scalar_lea.hbm %s1258_s3, %s720_s9  ;;  %s1208_s7 = int_to_ptr.vmem [resolvable:$true] %s628_s7 }
  0x39   : > { %206 = vadd.xlane.f32.xlu0 %v205_v7  ;;  %v208_v11 = vadd.f32 %v1069_v9, %v1066_v8  ;;  %v240_v12 = vmax.f32 %v1066_v8, %v1069_v9  ;;  %v217_v17 = vadd.f32 %v1083_v15, %v1080_v14  ;;  %v1093_v19 = vld [vmem:[%s1037_s11 + $0x58] sm:$0xff]  ;;  %v1100_v22 = vld [vmem:[%s1037_s11 + $0x60] sm:$0xff]  ;;  %v1103_v23 = vld [vmem:[%s1037_s11 + $0x68] sm:$0xff]  ;;  %v249_v24 = vmax.f32 %v1080_v14, %v1083_v15  ;;  %s615_s16 = scalar_lea.sflag [#allocation4], %s1031_s5  ;;  %s840_s20 = scalar_lea.vmem %s1208_s7, 2048 }
  0x3a   : > { %v220_v21 = vadd.f32 %v1093_v19, %v1090_v18  ;;  %v223_v25 = vadd.f32 %v1103_v23, %v1100_v22  ;;  %v1110_v26 = vld [vmem:[%s1037_s11 + $0x70] sm:$0xff]  ;;  %v1113_v27 = vld [vmem:[%s1037_s11 + $0x78] sm:$0xff]  ;;  %v252_v28 = vmax.f32 %v1090_v18, %v1093_v19  ;;  %v255_v31 = vmax.f32 %v1100_v22, %v1103_v23  ;;  %v380_v35 = vld [vmem:[%s1256_s1 + $0x28] sm:$0xff]  ;;  %p841_p11 = scmp.ne.s32.totalorder %s1208_s7, %s840_s20  ;;  %p1267_p12 = scmp.ne.s32.totalorder %s1263_s24, 0 }
  0x3b   : > { %v226_v29 = vadd.f32 %v1113_v27, %v1110_v26  ;;  %v258_v30 = vmax.f32 %v1110_v26, %v1113_v27  ;;  %v382_v33 = vld [vmem:[%s1256_s1 + $0x38] sm:$0xff]  ;;  %v381_v34 = vld [vmem:[%s1256_s1 + $0x30] sm:$0xff]  ;;  %v379_v36 = vld [vmem:[%s1256_s1 + $0x20] sm:$0xff]  ;;  %v275_v49 = vadd.s32 4294967288, %v270_v47  ;;  %v282_v55 = vadd.s32 4294967280, %v270_v47  ;;  %s911_s22 = smov [#allocation5]  }
  0x3c   : > { %215 = vadd.xlane.f32.xlu1 %v214_v10  ;;  %733 = vmatpush3.msra.mxu0 %v382_v33  ;;  %v378_v37 = vld [vmem:[%s1256_s1 + $0x18] sm:$0xff]  ;;  %v377_v38 = vld [vmem:[%s1256_s1 + $0x10] sm:$0xff]  ;;  %v376_v39 = vld [vmem:[%s1256_s1 + $0x8] sm:$0xff]  ;;  %v273_v57 = vsub.s32 %v270_v47, %v1147_v51  ;;  %v289_v59 = vadd.s32 4294967272, %v270_v47  ;;  %v296_v61 = vadd.s32 4294967264, %v270_v47  ;;  %v303_v62 = vadd.s32 4294967256, %v270_v47  ;;  %p842_p13 = pnand %p841_p11, %p1267_p12 }
  0x3d   : > { %209 = vadd.xlane.f32.xlu0 %v208_v11  ;;  %734 = vmatprep.subr.mxu0 %v909_v32  ;;  %v375_v40 = vld [vmem:[%s1256_s1] sm:$0xff]  ;;  %v278_v53 = vsub.s32 %v275_v49, %v1147_v51  ;;  %v285_v3 = vsub.s32 %v282_v55, %v1147_v51  ;;  %v310_v11 = vadd.s32 4294967248, %v270_v47  ;;  %vm315_vm6 = vcmask 458112   ;;  %s844_s26 = sshll.u32 %s911_s22, 4  ;;  %s845_s26 = int_to_ptr.vmem [resolvable:$false] %s844_s26 }
  0x3e   : > { %735 = vmatpush3.msra.mxu0 %v381_v34  ;;  %vm322_vm7 = vcmask 523712   ;;  %vm373_vm8 = vcmask 1040384   ;;  %vm383_vm9 = vcmask 523264   ;;  %vm463_vm10 = vcmask 1043456   ;;  %p843_p4 = pneg %p842_p13  ;;  %s846_s27 = scalar_lea.vmem %s845_s26, 4096 }
  0x3f   : > { %736 = vmatprep.subr.mxu0 %v909_v32  ;;  %v313_v34 = vsub.s32 %v310_v11, %v1147_v51  ;;  %v458_v11 = vld [vmem:[%s1257_s2] sm:$0xf]  ;;  %vm459_vm11 = vcmask 31744   ;;  %p847_p5 = scmp.lt.s32.totalorder %s1208_s7, %s845_s26  ;;  %p848_p7 = scmp.lt.s32.totalorder %s846_s27, %s840_s20 }
  0x40   : > { %241 = vmax.xlane.f32.xlu1 %v240_v12  ;;  %737 = vmatpush3.msra.mxu0 %v380_v35 }
  0x41   : > { %238 = vmax.xlane.f32.xlu0 %v237_v13  ;;  %738 = vmatprep.subr.mxu0 %v909_v32  ;;  %v292_v13 = vsub.s32 %v289_v59, %v1147_v51  ;;  %p849_p8 = por %p848_p7, %p847_p5 }
  0x42   : > { %739 = vmatpush3.msra.mxu0 %v379_v36  ;;  %752 = vmatpush3.msk.msra.mxu1 %vm463_vm10, %v458_v11 }
  0x43   : > { %740 = vmatprep.subr.mxu0 %v909_v32  ;;  %p850_p10 = pnand %p849_p8, %p843_p4 }
  0x44   : > { %244 = vmax.xlane.f32.xlu1 %v243_v16  ;;  %741 = vmatpush3.msra.mxu0 %v378_v37 }
  0x45   : > { %218 = vadd.xlane.f32.xlu0 %v217_v17  ;;  %742 = vmatprep.subr.mxu0 %v909_v32 }
  0x46   : > { %743 = vmatpush3.msra.mxu0 %v377_v38 }
  0x47   : > { %744 = vmatprep.subr.mxu0 %v909_v32 }
  0x48   : > { %247 = vmax.xlane.f32.xlu1 %v246_v20  ;;  %745 = vmatpush3.msra.mxu0 %v376_v39  ;;  %v317_v20 = vadd.s32 4294967240, %v270_v47 }
  0x49   : > { %221 = vadd.xlane.f32.xlu0 %v220_v21  ;;  %746 = vmatprep.subr.mxu0 %v909_v32  ;;  %v299_v21 = vsub.s32 %v296_v61, %v1147_v51 }
  0x4a   : > { %747 = vmatpush3.msra.mxu0 %v375_v40  ;;  %v320_v39 = vsub.s32 %v317_v20, %v1147_v51 }
  0x4c   : > { %250 = vmax.xlane.f32.xlu1 %v249_v24 }
  0x4d   : > { %224 = vadd.xlane.f32.xlu0 %v223_v25  ;;  %v306_v25 = vsub.s32 %v303_v62, %v1147_v51 }
  0x50   : > { %253 = vmax.xlane.f32.xlu1 %v252_v28 }
  0x51   : > { %227 = vadd.xlane.f32.xlu0 %v226_v29 }
  0x54   : > { %259 = vmax.xlane.f32.xlu1 %v258_v30 }
  0x55   : > { %256 = vmax.xlane.f32.xlu0 %v255_v31 }
  0xc1   : > { %v213_v41 = vpop.xlane.xlu1 %212 }
  0xc2   : > { %v207_v42 = vpop.xlane.xlu0 %206  ;;  %v231_v7 = vmul.f32 0.00390625, %v213_v41 }
  0xc3   : > { %v229_v58 = vmul.f32 0.00390625, %v207_v42 }
  0xc4   : > { %v286_v32 = vrot.slane %v231_v7, %v285_v3 }
  0xc5   : > { %v216_v43 = vpop.xlane.xlu1 %215  ;;  %v274_v12 = vrot.slane %v229_v58, %v273_v57 }
  0xc6   : > { %v210_v45 = vpop.xlane.xlu0 %209  ;;  %v232_v16 = vmul.f32 0.00390625, %v216_v43 }
  0xc7   : > { %v230_v54 = vmul.f32 0.00390625, %v210_v45 }
  0xc8   : > { %v293_v37 = vrot.slane %v232_v16, %v292_v13 }
  0xc9   : > { %v242_v46 = vpop.xlane.xlu1 %241  ;;  %v279_v63 = vrot.slane %v230_v54, %v278_v53 }
  0xca   : > { %v239_v48 = vpop.xlane.xlu0 %238  ;;  %v340_v29 = vrot.slane %v242_v46, %v278_v53 }
  0xcb   : > { %v281_v28 = vsel %vm280_vm1, %v279_v63, %v274_v12  ;;  %v336_v30 = vrot.slane %v239_v48, %v273_v57 }
  0xcc   : > { %v288_v41 = vsel %vm287_vm2, %v286_v32, %v281_v28 }
  0xcd   : > { %v245_v50 = vpop.xlane.xlu1 %244  ;;  %v341_v45 = vsel %vm280_vm1, %v340_v29, %v336_v30  ;;  %v549_v30 = vsub.s32 0, %v1147_v51 }
  0xce   : > { %v219_v52 = vpop.xlane.xlu0 %218  ;;  %v345_v33 = vrot.slane %v245_v50, %v285_v3 }
  0xcf   : > { %v233_v24 = vmul.f32 0.00390625, %v219_v52  ;;  %v295_v52 = vsel %vm294_vm3, %v293_v37, %v288_v41 }
  0xd0   : > { %v346_v48 = vsel %vm287_vm2, %v345_v33, %v341_v45 }
  0xd1   : > { %v248_v56 = vpop.xlane.xlu1 %247  ;;  %v300_v42 = vrot.slane %v233_v24, %v299_v21 }
  0xd2   : > { %v222_v60 = vpop.xlane.xlu0 %221  ;;  %v350_v38 = vrot.slane %v248_v56, %v292_v13 }
  0xd3   : > { %v234_v31 = vmul.f32 0.00390625, %v222_v60  ;;  %v302_v57 = vsel %vm301_vm4, %v300_v42, %v295_v52 }
  0xd4   : > { %v351_v53 = vsel %vm294_vm3, %v350_v38, %v346_v48 }
  0xd5   : > { %v251_v10 = vpop.xlane.xlu1 %250  ;;  %v307_v46 = vrot.slane %v234_v31, %v306_v25 }
  0xd6   : > { %v225_v17 = vpop.xlane.xlu0 %224  ;;  %v355_v43 = vrot.slane %v251_v10, %v299_v21 }
  0xd7   : > { %v235_v35 = vmul.f32 0.00390625, %v225_v17  ;;  %v309_v60 = vsel %vm308_vm5, %v307_v46, %v302_v57 }
  0xd8   : > { %v356_v58 = vsel %vm301_vm4, %v355_v43, %v351_v53 }
  0xd9   : > { %v254_v36 = vpop.xlane.xlu1 %253  ;;  %v314_v49 = vrot.slane %v235_v35, %v313_v34 }
  0xda   : > { %v228_v40 = vpop.xlane.xlu0 %227  ;;  %v360_v47 = vrot.slane %v254_v36, %v306_v25 }
  0xdb   : > { %v236_v44 = vmul.f32 0.00390625, %v228_v40  ;;  %v316_v62 = vsel %vm315_vm6, %v314_v49, %v309_v60 }
  0xdc   : > { %v361_v61 = vsel %vm308_vm5, %v360_v47, %v356_v58 }
  0xdd   : > { %v260_v50 = vpop.xlane.xlu1 %259  ;;  %v321_v54 = vrot.slane %v236_v44, %v320_v39 }
  0xde   : > { %v257_v55 = vpop.xlane.xlu0 %256  ;;  %v370_v56 = vrot.slane %v260_v50, %v320_v39 }
  0xdf   : > { %v365_v59 = vrot.slane %v257_v55, %v313_v34  ;;  %v323_v7 = vsel %vm322_vm7, %v321_v54, %v316_v62 }
  0xe1   : > { %v366_v63 = vsel %vm315_vm6, %v365_v59, %v361_v61 }
  0xe2   : > { %v371_v3 = vsel %vm322_vm7, %v370_v56, %v366_v63 }
  0xe3   : > { %v374_v10 = vsel %vm373_vm8, %v323_v7, %v371_v3 }
  0xe4   : > { %749 = vmatmul.mubr.msk.f32.vlgmr.msra.gmra.mxu0 %vm383_vm9, %v374_v10 }
 0x1a4   : > { %v453_v12 = vpop.f32.mrf.mxu0 }
 0x1a5   : > { %v457_v13 = vmax.f32 %v453_v12, 0.0 }
 0x1a6   : > { %v750_v16 = vpop.f32.mrf.mxu0 }
 0x1a7   : > { %754 = vmatmul.mubr.msk.f32.vlgmr.msra.gmra.mxu1 %vm459_vm11, %v457_v13 }
 0x267   : > { %v533_v17 = vpop.f32.mrf.mxu1 }
 0x268   : > { %v538_v20 = vrot.slane %v533_v17, 1 }
 0x269   : > { %v755_v21 = vpop.f32.mrf.mxu1 }
 0x26a   : > { %v540_v24 = vadd.f32 %v538_v20, %v533_v17 }
 0x26c   : > { %v713_v25 = vmul.f32 -1.442695, %v540_v24 }
 0x26e   : > { %808 = vpow2.f32 %v713_v25 }
 0x27b   : > { %v809_v28 = vpop.eup %808 }
 0x27c   : > { %v544_v29 = vadd.f32 1.0, %v809_v28 }
 0x27e   : > { %810 = vrcp.f32 %v544_v29 }
 0x28b   : > { %v811_v31 = vpop.eup %810 }
 0x28c   : > { %v550_v32 = vrot.slane %v811_v31, %v549_v30 }
 0x28e   : > { %556 = vbcast.lane.b32.xlu1 %v550_v32, 264  ;;  %552 = vbcast.lane.b32.xlu0 %v550_v32, 256 }
 0x292   : > { %560 = vbcast.lane.b32.xlu1 %v550_v32, 272  ;;  %568 = vbcast.lane.b32.xlu0 %v550_v32, 288 }
 0x296   : > { %564 = vbcast.lane.b32.xlu1 %v550_v32, 280  ;;  %576 = vbcast.lane.b32.xlu0 %v550_v32, 304 }
 0x29a   : > { %572 = vbcast.lane.b32.xlu1 %v550_v32, 296 }
 0x29e   : > { %580 = vbcast.lane.b32.xlu1 %v550_v32, 312 }
 0x300   : > { %v557_v33 = vpop.permute.xlu1 %556  ;;  %v553_v34 = vpop.permute.xlu0 %552 }
 0x301   : > { %v584_v35 = vmul.f32 %v557_v33, %v1066_v8  ;;  %v585_v36 = vmul.f32 %v557_v33, %v1069_v9  ;;  %v582_v37 = vmul.f32 %v553_v34, %v1050_v2  ;;  %v583_v51 = vmul.f32 %v553_v34, %v1055_v4 }
 0x303   : > { %600 = vst [vmem:[%s1175_s6 + $0x10] sm:$0xff] %v584_v35  ;;  %601 = vst [vmem:[%s1175_s6 + $0x18] sm:$0xff] %v585_v36 }
 0x304   : > { %598 = vst [vmem:[%s1175_s6] sm:$0xff] %v582_v37  ;;  %599 = vst [vmem:[%s1175_s6 + $0x8] sm:$0xff] %v583_v51  ;;  %v561_v8 = vpop.permute.xlu1 %560  ;;  %v569_v2 = vpop.permute.xlu0 %568 }
 0x305   : > { %v586_v4 = vmul.f32 %v561_v8, %v1044_v0  ;;  %v587_v9 = vmul.f32 %v561_v8, %v1047_v1  ;;  %v590_v38 = vmul.f32 %v569_v2, %v1080_v14  ;;  %v591_v39 = vmul.f32 %v569_v2, %v1083_v15 }
 0x307   : > { %602 = vst [vmem:[%s1175_s6 + $0x20] sm:$0xff] %v586_v4  ;;  %603 = vst [vmem:[%s1175_s6 + $0x28] sm:$0xff] %v587_v9 }
 0x308   : > { %606 = vst [vmem:[%s1175_s6 + $0x40] sm:$0xff] %v590_v38  ;;  %607 = vst [vmem:[%s1175_s6 + $0x48] sm:$0xff] %v591_v39  ;;  %v565_v40 = vpop.permute.xlu1 %564  ;;  %v577_v41 = vpop.permute.xlu0 %576 }
 0x309   : > { %v588_v0 = vmul.f32 %v565_v40, %v1058_v5  ;;  %v589_v42 = vmul.f32 %v565_v40, %v1061_v6  ;;  %v594_v1 = vmul.f32 %v577_v41, %v1100_v22  ;;  %v595_v14 = vmul.f32 %v577_v41, %v1103_v23 }
 0x30b   : > { %604 = vst [vmem:[%s1175_s6 + $0x30] sm:$0xff] %v588_v0  ;;  %605 = vst [vmem:[%s1175_s6 + $0x38] sm:$0xff] %v589_v42 }
 0x30c   : > { %610 = vst [vmem:[%s1175_s6 + $0x60] sm:$0xff] %v594_v1  ;;  %611 = vst [vmem:[%s1175_s6 + $0x68] sm:$0xff] %v595_v14  ;;  %v573_v15 = vpop.permute.xlu1 %572 }
 0x30d   : > { %v592_v43 = vmul.f32 %v573_v15, %v1090_v18  ;;  %v593_v44 = vmul.f32 %v573_v15, %v1093_v19 }
 0x30f   : > { %608 = vst [vmem:[%s1175_s6 + $0x50] sm:$0xff] %v592_v43  ;;  %609 = vst [vmem:[%s1175_s6 + $0x58] sm:$0xff] %v593_v44 }
 0x310   : > { %v581_v5 = vpop.permute.xlu1 %580 }
 0x311   : > { %v596_v6 = vmul.f32 %v581_v5, %v1110_v26  ;;  %v597_v18 = vmul.f32 %v581_v5, %v1113_v27 }
 0x313   : > { %612 = vst [vmem:[%s1175_s6 + $0x70] sm:$0xff] %v596_v6  ;;  %613 = vst [vmem:[%s1175_s6 + $0x78] sm:$0xff] %v597_v18 }
 0x314   : > { %853 = shalt.err (!%p850_p10)
}
 0x315   : > { %s854_s28 = scalar_lea.hbm %s1206_s19, 2048  ;;  %s858_s10 = scalar_lea.hbm %s1258_s3, 4096 }
 0x316   : > { %p855_p0 = scmp.ne.s32.totalorder %s1206_s19, %s854_s28  ;;  %p859_p1 = scmp.lt.s32.totalorder %s1206_s19, %s1258_s3 }
 0x317   : > { %p860_p3 = scmp.lt.s32.totalorder %s858_s10, %s854_s28 }
 0x318   : > { %p856_p2 = pnand %p855_p0, %p1267_p12 }
 0x319   : > { %p861_p6 = por %p860_p3, %p859_p1 }
 0x31a   : > { %p857_p9 = pneg %p856_p2 }
 0x31c   : > { %p862_p11 = pnand %p861_p6, %p857_p9 }
 0x31e   : > { %865 = shalt.err (!%p862_p11)
}
 0x31f   : > { %s912_s4 = smov 256   ;;  %s913_s6 = smov 16  }
 0x320   : > { %758 = dma.vmem_to_hbm [thread:$0]  (%p1267_p12), %s1208_s7, 2048, %s1206_s19, %s615_s16, %s912_s4, %s912_s4, %s913_s6  }
 0x321 PF: > { %s643_s9 = sand.u32 1, %s892_s12   ;;  %p1268_p13 = scmp.ne.s32.totalorder %s1264_s25, 0 }
 0x322   : > { %p1269_p4 = scmp.ge.s32.totalorder %s904_s15, 2  ;;  %s644_s8 = scalar_lea.sflag [#allocation4], %s643_s9 }
 0x324   : > { %p765_p5 = pnand %p1269_p4, %p1268_p13 }
 0x326   : > { %p766_p7 = pneg %p765_p5 }
 0x328   : > { %887 = dma.done.wait (%p766_p7), %s644_s8, 2048  }
 0x329   : > { %889 = vsyncadd (%p766_p7), %s644_s8, 4294965248  ;;  %p16_p8 = scmp.ge.s32.totalorder %s959_s18, 4   ;;  %s1270_s12 = smov %s896_s13 }
 0x32a   : > { %s1271_s13 = smov %s900_s14  ;;  %s1272_s14 = smov %s971_s21 }
 0x32b   : > { %s1273_s15 = smov %s959_s18  ;;  %18 = sbr.rel (!%p16_p8) target bundleno = 5 (0x5), region = 77 }
 0x330   :  { %649 = vsyncpa [#allocation3], 1 }
 0x331   :  { %651 = vsyncpa [#allocation3 + $0x1], 1 }
 0x332   :  { %652 = vsyncpa [#allocation4], 1 }
 0x333   :  { %654 = vsyncpa [#allocation4 + $0x1], 1 }

</bundles_post_ra>
